<compile_context>
chip_gen: v6e
topology: v6e:2x2x1
jax: 0.10.0
libtpu: 0.0.40
codegen_flags: <defaults>
</compile_context>

<pallas_src>
import functools
import numpy as np
import jax
import jax.numpy as jnp
from jax.experimental import pallas as pl
from jax.experimental.pallas import tpu as pltpu

ANCHORS = np.array([[10, 13], [16, 30], [33, 23], [30, 61], [62, 45],
                    [59, 119], [116, 90], [156, 198], [373, 326]], np.float32)


def round_up(x, m):
    return ((x + m - 1) // m) * m


def _vmem_limit(fp_bytes):
    # footprint + headroom; never request the full physical VMEM of any
    # generation (v7x TensorCore has only 64 MiB physical).
    return int(min(max(fp_bytes + 8 * 2**20, 24 * 2**20), 48 * 2**20))


# ----------------------------- Pallas kernels ------------------------------

def _make_mm_kernel(act, has_res, has_a2, multi_k):
    """(K-tiled) matmul; epilogue fuses +bias (+residual) + activation.
    When multi_k is False there is no accumulator scratch and the epilogue runs
    directly on the dot output (single K step)."""
    def kernel(*refs):
        refs = list(refs)
        a_ref = refs.pop(0)
        a2_ref = refs.pop(0) if has_a2 else None
        w_ref = refs.pop(0)
        b_ref = refs.pop(0)
        r_ref = refs.pop(0) if has_res else None
        o_ref = refs.pop(0)
        acc_ref = refs.pop(0) if multi_k else None

        a = a_ref[...]
        if has_a2:
            a = a + a2_ref[...]                       # fused input-side add
        part = jnp.dot(a, w_ref[...], preferred_element_type=jnp.float32)

        def epilogue(y):
            y = y + b_ref[...]
            if has_res:
                y = y + r_ref[...].astype(jnp.float32)
            if act == "relu":
                y = jnp.maximum(y, 0.0)
            elif act == "leaky":
                y = jnp.maximum(y, 0.1 * y)
            o_ref[...] = y.astype(o_ref.dtype)

        if not multi_k:
            epilogue(part)
        else:
            k = pl.program_id(2)

            @pl.when(k == 0)
            def _():
                acc_ref[...] = part                   # direct assign, no zero+add

            @pl.when(k > 0)
            def _():
                acc_ref[...] += part

            @pl.when(k == pl.num_programs(2) - 1)
            def _():
                epilogue(acc_ref[...])

    return kernel


def _tapped_mm_kernel(x_ref, w_ref, b_ref, o_ref, *, m, c, offs, act):
    """Fused im2col 3x3/stride-1 conv: x_ref is the flattened, spatially padded
    activation (one batch-merged slab or one image) of shape (1, L, c); each tap
    is a static shifted row-window, reduced in-kernel with f32 accumulation."""
    acc = None
    for t, off in enumerate(offs):
        a = x_ref[0, off:off + m, :]
        part = jnp.dot(a, w_ref[t * c:(t + 1) * c, :],
                       preferred_element_type=jnp.float32)
        acc = part if acc is None else acc + part
    y = acc + b_ref[...]
    if act == "relu":
        y = jnp.maximum(y, 0.0)
    elif act == "leaky":
        y = jnp.maximum(y, 0.1 * y)
    o_ref[0] = y.astype(o_ref.dtype)


def _yolo_decode_kernel(p_ref, o_ref, *, stride, nx, ny, na, anchors):
    p = p_ref[...]
    r = jax.lax.broadcasted_iota(jnp.int32, p.shape, 0)
    c = jax.lax.broadcasted_iota(jnp.int32, p.shape, 1)
    xg = (r % nx).astype(jnp.float32)
    yg = ((r // nx) % ny).astype(jnp.float32)
    ai = (r // (nx * ny)) % na
    e = jnp.exp(p)                       # single transcendental
    sig = 1.0 - 1.0 / (1.0 + e)          # == sigmoid(p), stable for p -> +/-inf
    gridv = jnp.where(c == 0, xg, yg)
    aw = jnp.zeros(p.shape, jnp.float32)
    ah = jnp.zeros(p.shape, jnp.float32)
    for k in range(na):
        aw = jnp.where(ai == k, anchors[k][0], aw)
        ah = jnp.where(ai == k, anchors[k][1], ah)
    anch = jnp.where(c == 2, aw, ah)
    xy = (sig + gridv) * stride          # io[..., :2] * stride
    wh = e * anch                        # exp * (anchors/stride) * stride
    o_ref[...] = jnp.where(c < 2, xy, jnp.where(c < 4, wh, sig))
    # TODO(synk): decode output is (m, 9) -> masked lane stores; lane-dense
    # layout is a possible (tiny) follow-up win.


# --------------------------- Pallas call wrappers ---------------------------

def matmul_fused(a, wm, bias2d, n_out, act, residual=None, a2=None,
                 out_dtype=jnp.bfloat16):
    """a:[M,K] -> act((a (+a2)) @ wm + bias (+residual))[:, :n_out]."""
    M, K = a.shape
    Kp, Np = wm.shape
    a = a.astype(jnp.bfloat16)
    if a2 is not None:
        a2 = a2.astype(jnp.bfloat16)
    if K != Kp:
        a = jnp.pad(a, ((0, 0), (0, Kp - K)))
        if a2 is not None:
            a2 = jnp.pad(a2, ((0, 0), (0, Kp - K)))

    tm = 512 if M >= 512 else min(256, round_up(M, 8))
    Mp = round_up(M, tm)
    if Mp != M:
        a = jnp.pad(a, ((0, Mp - M), (0, 0)))
        if a2 is not None:
            a2 = jnp.pad(a2, ((0, Mp - M), (0, 0)))

    if tm <= 32 and Np % 512 == 0:
        tn = 512
    elif Np % 256 == 0:
        tn = 256
    else:
        tn = 128

    # Largest K tile dividing Kp under a VMEM block budget (collapses K to a
    # single step for every call in this model at these shapes, eliminating the
    # A re-stream across N tiles and the accumulator scratch).
    n_a = 2 if a2 is not None else 1

    def blocks_bytes(tk_):
        return 2 * (n_a * tm * tk_ * 2 + tk_ * tn * 2)

    budget = 20 * 2**20
    tk = 128
    for cand in range(Kp, 0, -128):
        if Kp % cand == 0 and blocks_bytes(cand) <= budget:
            tk = cand
            break
    nk = Kp // tk
    multi_k = nk > 1
    has_res = residual is not None
    has_a2 = a2 is not None

    inputs = [a]
    in_specs = [pl.BlockSpec((tm, tk), lambda i, j, k: (i, k))]
    if has_a2:
        inputs.append(a2)
        in_specs.append(pl.BlockSpec((tm, tk), lambda i, j, k: (i, k)))
    inputs += [wm, bias2d]
    in_specs += [pl.BlockSpec((tk, tn), lambda i, j, k: (k, j)),
                 pl.BlockSpec((1, tn), lambda i, j, k: (0, j))]
    if has_res:
        r = residual.astype(jnp.bfloat16)
        if r.shape[0] != Mp or r.shape[1] != Np:
            r = jnp.pad(r, ((0, Mp - r.shape[0]), (0, Np - r.shape[1])))
        inputs.append(r)
        in_specs.append(pl.BlockSpec((tm, tn), lambda i, j, k: (i, j)))

    out_b = jnp.dtype(out_dtype).itemsize
    fp = (blocks_bytes(tk) + 2 * tn * 4 + (2 * tm * tn * 2 if has_res else 0)
          + 2 * tm * tn * out_b + (tm * tn * 4 if multi_k else 0))

    out = pl.pallas_call(
        _make_mm_kernel(act, has_res, has_a2, multi_k),
        out_shape=jax.ShapeDtypeStruct((Mp, Np), out_dtype),
        grid=(Mp // tm, Np // tn, nk),
        in_specs=in_specs,
        out_specs=pl.BlockSpec((tm, tn), lambda i, j, k: (i, j)),
        scratch_shapes=[pltpu.VMEM((tm, tn), jnp.float32)] if multi_k else [],
        compiler_params=pltpu.CompilerParams(
            dimension_semantics=("parallel", "parallel", "arbitrary"),
            vmem_limit_bytes=_vmem_limit(fp)),
    )(*inputs)
    if Mp != M or Np != n_out:
        out = out[:M, :n_out]
    return out


def im2col(x, kh, kw, stride, pad):
    """Tap-major im2col (stride>=2 / 7x7 convs only): [N,H,W,C]->[N*Ho*Wo,kh*kw*C]."""
    n, h, w, c = x.shape
    ho = (h + 2 * pad - kh) // stride + 1
    wo = (w + 2 * pad - kw) // stride + 1
    xp = jnp.pad(x, ((0, 0), (pad, pad), (pad, pad), (0, 0)))
    cols = []
    for i in range(kh):
        for j in range(kw):
            cols.append(xp[:, i:i + stride * (ho - 1) + 1:stride,
                           j:j + stride * (wo - 1) + 1:stride, :])
    a = jnp.concatenate(cols, axis=-1)
    return a.reshape(n * ho * wo, kh * kw * c), ho, wo


def _conv3x3_s1_pallas(x, w_arr, bias2d, n_out, act, *, grouped):
    """Fused-im2col 3x3 stride-1 pad-1 conv (dense or grouped)."""
    n, h, w, cin = x.shape
    Np = bias2d.shape[1]
    hp, wp_ = h + 2, w + 2
    m = hp * wp_
    tail = 2 * wp_ + 2
    L = m + tail
    offs = tuple(di * wp_ + dj for di in range(3) for dj in range(3))

    xq = jnp.pad(x.astype(jnp.bfloat16), ((0, 0), (1, 1), (1, 1), (0, 0)))
    flat = jnp.pad(xq.reshape(n, m, cin), ((0, 0), (0, tail), (0, 0)))  # (n,L,cin)

    # Merge batch into the row axis when small so the weight is streamed once
    # per conv instead of once per image.
    merge = (n * L) <= 8192
    if merge:
        flat = flat.reshape(1, n * L, cin)
        mq, nb = (n - 1) * L + m, 1
    else:
        mq, nb = m, n
    Lr = flat.shape[1]

    if grouped:
        cblk, tn = 128, 128
        nj = cin // 128                     # super-groups (cin == cout)
        x_spec = pl.BlockSpec((1, Lr, 128), lambda b, j: (b, 0, j))
        w_spec = pl.BlockSpec((9 * 128, 128), lambda b, j: (j, 0))
    else:
        cblk = cin
        tn = 128
        for cand in (512, 256, 128):
            if Np % cand == 0 and 2 * 9 * cin * cand * 2 <= 20 * 2**20:
                tn = cand
                break
        nj = Np // tn
        x_spec = pl.BlockSpec((1, Lr, cin), lambda b, j: (b, 0, 0))
        w_spec = pl.BlockSpec((9 * cin, tn), lambda b, j: (0, j))

    fp = (2 * (Lr * cblk * 2 + 9 * cblk * tn * 2 + tn * 4 + mq * tn * 2)
          + mq * cblk * 2 + mq * tn * 4)

    out = pl.pallas_call(
        functools.partial(_tapped_mm_kernel, m=mq, c=cblk, offs=offs, act=act),
        out_shape=jax.ShapeDtypeStruct((nb, mq, Np), jnp.bfloat16),
        grid=(nb, nj),
        in_specs=[x_spec, w_spec,
                  pl.BlockSpec((1, tn), lambda b, j: (0, j))],
        out_specs=pl.BlockSpec((1, mq, tn), lambda b, j: (b, 0, j)),
        compiler_params=pltpu.CompilerParams(
            dimension_semantics=("parallel", "parallel"),
            vmem_limit_bytes=_vmem_limit(fp)),
    )(flat, w_arr, bias2d)

    if merge:
        o = out[0]
        if n * L != mq:
            o = jnp.pad(o, ((0, n * L - mq), (0, 0)))
        o = o.reshape(n, L, Np)[:, :m]
    else:
        o = out
    return o.reshape(n, hp, wp_, Np)[:, :h, :w, :n_out]


def conv_bn_act(x, p, stride, pad, act, residual=None, a2=None,
                out_dtype=jnp.bfloat16):
    k = p["k"]
    cout = p["n_out"]
    n = x.shape[0]
    if (k == 3 and stride == 1 and pad == 1 and x.shape[-1] % 128 == 0
            and residual is None and a2 is None and out_dtype == jnp.bfloat16):
        return _conv3x3_s1_pallas(x, p["wm"], p["bias2d"], cout, act,
                                  grouped=False)
    if k == 1:
        if stride > 1:
            x = x[:, ::stride, ::stride, :]
        _, ho, wo, cin = x.shape
        a = x.reshape(n * ho * wo, cin)
        a2m = None if a2 is None else a2.reshape(n * ho * wo, cin)
    else:
        a, ho, wo = im2col(x, k, k, stride, pad)
        a2m = None
    r = None if residual is None else residual.reshape(-1, cout)
    out = matmul_fused(a, p["wm"], p["bias2d"], cout, act, residual=r, a2=a2m,
                       out_dtype=out_dtype)
    return out.reshape(n, ho, wo, cout)


def grouped_conv_s2(x, p, act):
    """ResNeXt grouped 3x3 stride-2 conv: group-major im2col + single-K-step
    matmul per super-group (no k grid axis, no accumulator scratch)."""
    n, h, w, cin = x.shape
    cout = p["cout"]
    sg = cout // 128
    stride = 2
    xp = jnp.pad(x, ((0, 0), (1, 1), (1, 1), (0, 0))).astype(jnp.bfloat16)
    ho = (h + 2 - 3) // stride + 1
    wo = (w + 2 - 3) // stride + 1
    cols = []
    for b in range(cin // 128):
        for i in range(3):
            for j in range(3):
                cols.append(xp[:, i:i + stride * (ho - 1) + 1:stride,
                               j:j + stride * (wo - 1) + 1:stride,
                               b * 128:(b + 1) * 128])
    a = jnp.concatenate(cols, axis=-1).reshape(n * ho * wo, cin * 9)
    M = n * ho * wo
    tm = min(256, round_up(M, 8))
    Mp = round_up(M, tm)
    if Mp != M:
        a = jnp.pad(a, ((0, Mp - M), (0, 0)))
    fp = 2 * (tm * 1152 * 2 + 1152 * 128 * 2 + 128 * 4 + tm * 128 * 2)
    out = pl.pallas_call(
        _make_mm_kernel(act, False, False, False),
        out_shape=jax.ShapeDtypeStruct((Mp, cout), jnp.bfloat16),
        grid=(Mp // tm, sg),
        in_specs=[pl.BlockSpec((tm, 9 * 128), lambda i, j: (i, j)),
                  pl.BlockSpec((9 * 128, 128), lambda i, j: (j, 0)),
                  pl.BlockSpec((1, 128), lambda i, j: (0, j))],
        out_specs=pl.BlockSpec((tm, 128), lambda i, j: (i, j)),
        compiler_params=pltpu.CompilerParams(
            dimension_semantics=("parallel", "parallel"),
            vmem_limit_bytes=_vmem_limit(fp)),
    )(a, p["wp"], p["bias2d"])
    if Mp != M:
        out = out[:M]
    return out.reshape(n, ho, wo, cout)


def grouped_conv_bn_act(x, p, stride, act):
    if stride == 1:
        return _conv3x3_s1_pallas(x, p["wp"], p["bias2d"], p["cout"], act,
                                  grouped=True)
    return grouped_conv_s2(x, p, act)


def maxpool_3x3_s2(x):
    # glue: MaxPool2d(3, stride=2, padding=1) semantics
    return jax.lax.reduce_window(x, jnp.array(-jnp.inf, x.dtype), jax.lax.max,
                                 (1, 3, 3, 1), (1, 2, 2, 1),
                                 [(0, 0), (1, 1), (1, 1), (0, 0)])


def upsample2x_bilinear(x):
    # glue: F.interpolate(scale_factor=2, mode='bilinear', align_corners=False)
    n, h, w, c = x.shape
    return jax.image.resize(x, (n, 2 * h, 2 * w, c), method="bilinear")


# ---------------------------- parameter builders ----------------------------

class ParamGen:
    def __init__(self, seed=0):
        self.rng = np.random.default_rng(seed)

    def _bn(self, cout, eps):
        gamma = self.rng.uniform(0.8, 1.2, cout).astype(np.float32)
        beta = (self.rng.standard_normal(cout) * 0.05).astype(np.float32)
        mean = (self.rng.standard_normal(cout) * 0.05).astype(np.float32)
        var = self.rng.uniform(0.8, 1.2, cout).astype(np.float32)
        scale = gamma / np.sqrt(var + eps)
        bias = beta - mean * scale
        return scale.astype(np.float32), bias.astype(np.float32)

    @staticmethod
    def _pack_dense(w, scale, bias, k):
        # fold BN scale into weights, lay out as [K=kh*kw*Cin, Cout] tap-major,
        # pre-pad K/N to multiples of 128, cast to bf16.
        cout, cin, kh, kw = w.shape
        wm = np.transpose(w * scale[:, None, None, None], (2, 3, 1, 0))
        wm = wm.reshape(kh * kw * cin, cout)
        K, N = wm.shape
        Kp, Np = round_up(K, 128), round_up(N, 128)
        wm = np.pad(wm, ((0, Kp - K), (0, Np - N)))
        b = np.pad(bias, (0, Np - N)).reshape(1, Np)
        return {"wm": jnp.asarray(wm, jnp.bfloat16),
                "bias2d": jnp.asarray(b, jnp.float32),
                "k": k, "n_out": N}

    def conv_bn(self, cin, cout, k, eps=1e-5):
        fan_in = cin * k * k
        w = (self.rng.standard_normal((cout, cin, k, k), dtype=np.float32)
             * (0.5 / np.sqrt(fan_in)))
        scale, bias = self._bn(cout, eps)
        return self._pack_dense(w, scale, bias, k)

    def conv_bias(self, cin, cout, k):
        fan_in = cin * k * k
        w = (self.rng.standard_normal((cout, cin, k, k), dtype=np.float32)
             * (0.5 / np.sqrt(fan_in)))
        b = (self.rng.standard_normal(cout) * 0.05).astype(np.float32)
        return self._pack_dense(w, np.ones(cout, np.float32), b, k)

    def conv_bn_grouped(self, cin, cout, k, groups, eps=1e-5):
        cg = cin // groups
        ng = cout // groups
        fan_in = cg * k * k
        w = (self.rng.standard_normal((cout, cg, k, k), dtype=np.float32)
             * (0.5 / np.sqrt(fan_in)))
        scale, bias = self._bn(cout, eps)
        assert cg == ng and 128 % ng == 0 and cin % 128 == 0 and cout % 128 == 0
        gp = 128 // ng                      # groups packed per 128-wide tile
        sg = groups // gp                   # super-groups
        wf = w * scale[:, None, None, None]
        khkw = k * k
        # packed block-diagonal weight: [sg, tap, 128(in), 128(out)]
        wp = np.zeros((sg, khkw, 128, 128), np.float32)
        for s in range(sg):
            for gis in range(gp):
                g = s * gp + gis
                blk = np.transpose(wf[g * ng:(g + 1) * ng], (2, 3, 1, 0))
                blk = blk.reshape(khkw, cg, ng)
                wp[s, :, gis * cg:(gis + 1) * cg, gis * ng:(gis + 1) * ng] = blk
        wp = wp.reshape(sg * khkw * 128, 128)
        return {"wp": jnp.asarray(wp, jnp.bfloat16),
                "bias2d": jnp.asarray(bias.reshape(1, cout), jnp.float32),
                "cout": cout}


def build_params():
    g = ParamGen(0)

    def bottleneck(inplanes, planes, stride, downsample):
        width = int(planes * (8 / 64.0)) * 32
        return {
            "conv1": g.conv_bn(inplanes, width, 1),
            "conv2": g.conv_bn_grouped(width, width, 3, 32),
            "conv3": g.conv_bn(width, planes * 4, 1),
            "downsample": g.conv_bn(inplanes, planes * 4, 1) if downsample else None,
            "stride": stride,
        }

    def layer(inplanes, planes, blocks, stride):
        blks = [bottleneck(inplanes, planes, stride, True)]
        for _ in range(blocks - 1):
            blks.append(bottleneck(planes * 4, planes, 1, False))
        return blks

    backbone = {
        "conv1": g.conv_bn(3, 64, 7),
        "layer1": layer(64, 64, 3, 1),
        "layer2": layer(256, 128, 4, 2),
        "layer3": layer(512, 256, 23, 2),
        "layer4": layer(1024, 512, 3, 2),
    }
    head_cfg = [(3, 256, 2), (256, 256, 2), (256, 512, 2), (512, 512, 2),
                (512, 1024, 2), (1024, 1024, 1), (1024, 2048, 1), (2048, 2048, 1)]
    yolo_head = [(g.conv_bn(ci, co, 3, eps=1e-4), s) for ci, co, s in head_cfg]

    def conv_seq(cfg):
        return [(g.conv_bn(ci, co, k, eps=1e-4), (k - 1) // 2) for ci, co, k in cfg]

    return {
        "backbone": backbone,
        "yolo_head": yolo_head,
        "yolo4_1": g.conv_bn(2048, 256, 1, eps=1e-4),
        "yolo4_hack": g.conv_bias(256, 27, 1),
        "yolo3_1": g.conv_bn(2048, 256, 1, eps=1e-4),
        "yolo3_2": g.conv_bn(1024, 512, 1, eps=1e-4),
        "yolo3_3": conv_seq([(768, 256, 1), (256, 512, 3), (512, 256, 1),
                             (256, 512, 3), (512, 256, 1), (256, 512, 3)]),
        "yolo3_hack": g.conv_bias(512, 27, 1),
        "yolo2_1": g.conv_bn(512, 256, 1, eps=1e-4),
        "yolo2_2": g.conv_bn(512, 128, 1, eps=1e-4),
        "yolo2_3": conv_seq([(384, 128, 1), (128, 256, 3), (256, 128, 1),
                             (128, 256, 3), (256, 128, 1), (128, 256, 3)]),
        "yolo2_hack": g.conv_bias(256, 27, 1),
    }


# ------------------------------- forward pass --------------------------------

def bottleneck_forward(x, p):
    # TODO(synk): layer3/4 blocks (M=8-32 rows) could be fused into a single
    # pallas_call keeping intermediates in VMEM; left for a follow-up.
    out = conv_bn_act(x, p["conv1"], 1, 0, "relu")
    out = grouped_conv_bn_act(out, p["conv2"], p["stride"], "relu")
    if p["downsample"] is not None:
        identity = conv_bn_act(x, p["downsample"], p["stride"], 0, "none")
    else:
        identity = x
    # residual add + ReLU fused into the conv3 matmul epilogue
    return conv_bn_act(out, p["conv3"], 1, 0, "relu", residual=identity)


def backbone_forward(x, bp):
    y = conv_bn_act(x, bp["conv1"], 2, 3, "relu")
    y = maxpool_3x3_s2(y)
    for blk in bp["layer1"]:
        y = bottleneck_forward(y, blk)
    l1 = y
    for blk in bp["layer2"]:
        y = bottleneck_forward(y, blk)
    l2 = y
    for blk in bp["layer3"]:
        y = bottleneck_forward(y, blk)
    l3 = y
    for blk in bp["layer4"]:
        y = bottleneck_forward(y, blk)
    return l1, l2, l3, y


def yolo_layer(p_nhwc, mask, stride, nc=4):
    na, no = 3, nc + 5
    bs, ny, nx, _ = p_nhwc.shape
    # NHWC [bs,ny,nx,na*no] -> [bs,na,ny,nx,no]  (== view+permute in PyTorch)
    p = jnp.transpose(p_nhwc.reshape(bs, ny, nx, na, no), (0, 3, 1, 2, 4))
    p = p.astype(jnp.float32)
    anchors = tuple((float(ANCHORS[m][0]), float(ANCHORS[m][1])) for m in mask)
    m = bs * na * ny * nx
    # TODO(synk): the three detection-head hack convs / decodes could be batched
    # into one call for better megacore coverage on v7x.
    io = pl.pallas_call(
        functools.partial(_yolo_decode_kernel, stride=float(stride),
                          nx=nx, ny=ny, na=na, anchors=anchors),
        out_shape=jax.ShapeDtypeStruct((m, no), jnp.float32),
    )(p.reshape(m, no))
    return io.reshape(bs, -1, no), p


def main_model_forward(x_nchw, params):
    x = jnp.transpose(x_nchw, (0, 2, 3, 1)).astype(jnp.bfloat16)  # NCHW -> NHWC
    l1, l2, l3, l4 = backbone_forward(x, params["backbone"])

    h = x
    for p, s in params["yolo_head"]:
        h = conv_bn_act(h, p, s, 1, "leaky")

    # --- stride-32 head ---  (h + l4 add fused into the yolo4_1 matmul)
    y41 = conv_bn_act(h, params["yolo4_1"], 1, 0, "leaky", a2=l4)
    y42 = conv_bn_act(y41, params["yolo4_hack"], 1, 0, "none",
                      out_dtype=jnp.float32)
    io4, p4 = yolo_layer(y42, [6, 7, 8], 32)

    # --- stride-16 head ---
    y31 = conv_bn_act(upsample2x_bilinear(l4), params["yolo3_1"], 1, 0, "leaky")
    y32 = conv_bn_act(l3, params["yolo3_2"], 1, 0, "leaky")
    y34 = jnp.concatenate([y31, y32], axis=-1)
    for p, pad in params["yolo3_3"]:
        y34 = conv_bn_act(y34, p, 1, pad, "leaky")
    y35 = conv_bn_act(y34, params["yolo3_hack"], 1, 0, "none",
                      out_dtype=jnp.float32)
    io3, p3 = yolo_layer(y35, [3, 4, 5], 16)

    # --- stride-8 head ---
    y21 = conv_bn_act(l2, params["yolo2_1"], 1, 0, "leaky")
    y22 = conv_bn_act(upsample2x_bilinear(y34), params["yolo2_2"], 1, 0, "leaky")
    y24 = jnp.concatenate([y21, y22], axis=-1)
    for p, pad in params["yolo2_3"]:
        y24 = conv_bn_act(y24, p, 1, pad, "leaky")
    y25 = conv_bn_act(y24, params["yolo2_hack"], 1, 0, "none",
                      out_dtype=jnp.float32)
    io2, p2 = yolo_layer(y25, [0, 1, 2], 8)

    out = jnp.concatenate([io4, io3, io2], axis=1)
    return out, (p4, p3, p2)


if __name__ == "__main__":
    # TODO(synk): original backbone weights come from torch.hub (network); here
    # all parameters are deterministic synthetic initializations.
    params = build_params()
    key = jax.random.PRNGKey(0)
    x = jax.random.normal(key, (2, 3, 64, 64), dtype=jnp.float32)

    out, (p4, p3, p2) = main_model_forward(x, params)
    out = jax.block_until_ready(out)
    jax.block_until_ready((p4, p3, p2))

    assert out.shape == (2, 252, 9)          # 3*(2*2 + 4*4 + 8*8) anchors
    assert p4.shape == (2, 3, 2, 2, 9)
    assert p3.shape == (2, 3, 4, 4, 9)
    assert p2.shape == (2, 3, 8, 8, 9)
    print("KERNEL_OK")
</pallas_src>

<mosaic_0001>
module attributes {stable_mosaic.version = 11 : i64} {
  func.func @kernel(%arg0: i32, %arg1: i32, %arg2: i32, %arg3: memref<512x256xbf16, #tpu.memory_space<vmem>>, %arg4: memref<256x128xbf16, #tpu.memory_space<vmem>>, %arg5: memref<1x128xf32, #tpu.memory_space<vmem>>, %arg6: memref<512x128xbf16, #tpu.memory_space<vmem>>) attributes {dimension_semantics = [#tpu.dimension_semantics<parallel>, #tpu.dimension_semantics<parallel>, #tpu.dimension_semantics<arbitrary>], iteration_bounds = array<i64: 4, 1, 1>, scalar_prefetch = 0 : i64, scratch_operands = 0 : i64, tpu.core_type = #tpu.core_type<tc>, window_params = [{transform_indices = @transform_0, window_bounds = array<i64: 512, 256>}, {transform_indices = @transform_1, window_bounds = array<i64: 256, 128>}, {transform_indices = @transform_2, window_bounds = array<i64: 1, 128>}, {transform_indices = @transform_3, window_bounds = array<i64: 512, 128>}]} {
    %c0 = arith.constant 0 : index
    %c0_0 = arith.constant 0 : index
    %0 = vector.load %arg3[%c0, %c0_0] : memref<512x256xbf16, #tpu.memory_space<vmem>>, vector<512x256xbf16>
    %c0_1 = arith.constant 0 : index
    %c0_2 = arith.constant 0 : index
    %1 = vector.load %arg4[%c0_1, %c0_2] : memref<256x128xbf16, #tpu.memory_space<vmem>>, vector<256x128xbf16>
    %cst = arith.constant dense<0.000000e+00> : vector<512x128xf32>
    %2 = tpu.matmul %0, %1, %cst {dimension_numbers = #tpu.dot_dimension_numbers<[1], [0], [0], [1], [0, 0, 1, 1], [], []>} : vector<512x256xbf16>, vector<256x128xbf16>, vector<512x128xf32> -> vector<512x128xf32>
    %c0_3 = arith.constant 0 : index
    %c0_4 = arith.constant 0 : index
    %3 = vector.load %arg5[%c0_3, %c0_4] : memref<1x128xf32, #tpu.memory_space<vmem>>, vector<1x128xf32>
    %4 = vector.broadcast %3 : vector<1x128xf32> to vector<512x128xf32>
    %5 = arith.addf %2, %4 : vector<512x128xf32>
    %cst_5 = arith.constant 0.000000e+00 : f32
    %6 = vector.broadcast %cst_5 : f32 to vector<512x128xf32>
    %7 = arith.maximumf %5, %6 : vector<512x128xf32>
    %8 = arith.truncf %7 : vector<512x128xf32> to vector<512x128xbf16>
    %c0_6 = arith.constant 0 : index
    %c0_7 = arith.constant 0 : index
    %9 = vector.load %arg6[%c0_6, %c0_7] : memref<512x128xbf16, #tpu.memory_space<vmem>>, vector<512x128xbf16>
    tpu.vector_store %arg6[%c0_6, %c0_7], %8 {strides = array<i32>} : memref<512x128xbf16, #tpu.memory_space<vmem>>, vector<512x128xbf16>,
    return
  }
  func.func @transform_0(%arg0: i32, %arg1: i32, %arg2: i32) -> (i32, i32) {
    %c0_i32 = arith.constant 0 : i32
    return %arg0, %arg2 : i32, i32
  }
  func.func @transform_1(%arg0: i32, %arg1: i32, %arg2: i32) -> (i32, i32) {
    %c0_i32 = arith.constant 0 : i32
    return %arg2, %arg1 : i32, i32
  }
  func.func @transform_2(%arg0: i32, %arg1: i32, %arg2: i32) -> (i32, i32) {
    %c0_i32 = arith.constant 0 : i32
    %c0_i32_0 = arith.constant 0 : i32
    return %c0_i32, %arg1 : i32, i32
  }
  func.func @transform_3(%arg0: i32, %arg1: i32, %arg2: i32) -> (i32, i32) {
    %c0_i32 = arith.constant 0 : i32
    return %arg0, %arg1 : i32, i32
  }
}

</mosaic_0001>

<bundles_post_ra>
// kernel: tpu_custom_call.1
= control target key start
LH: loop header
LB: loop body
LE: loop exit
PB: predicated region body
PF: predicated region fallthrough
CT: control target
= control target key end

     0   :  { %8 = vsyncpa [#allocation3], 0  ;;  %s2780_s0 = inlined_call_operand.hbm [shape: bf16[2048,256], index: 0, kind: input, shape index: {}]   ;;  %s2781_s1 = inlined_call_operand.hbm [shape: bf16[256,128], index: 1, kind: input, shape index: {}]   ;;  %s2782_s2 = inlined_call_operand.vmem [shape: f32[1,128], index: 2, kind: input, shape index: {}]   ;;  %s2783_s3 = inlined_call_operand.hbm [shape: bf16[2048,128], index: 3, kind: output, shape index: {}]  }
   0x1   :  { %10 = vsyncpa [#allocation3 + $0x1], 0 }
   0x2   :  { %11 = vsyncpa [#allocation6], 0 }
   0x3   :  { %12 = vsyncpa [#allocation4], 0 }
   0x4   :  { %14 = vsyncpa [#allocation4 + $0x1], 0  ;;  %s2398_s12 = smov 0   ;;  %s2400_s13 = smov 0  }
   0x5   :  { %s2402_s14 = smov 0   ;;  %s2404_s15 = smov 0  }
   0x6   :  { %s2406_s16 = smov 0   ;;  %s2408_s17 = smov 0  }
   0x7 LB: > { %s1582_s18 = sadd.s32 4294967295, %s2366_s17   ;;  %s1583_s19 = sadd.s32 4294967294, %s2366_s17   ;;  %s2366_s17 = sphi %s2408_s17, %s20_s17   ;;  %s2362_s16 = sphi %s2406_s16, %s2800_s16   ;;  %s2358_s15 = sphi %s2404_s15, %s2799_s15   ;;  %s2354_s14 = sphi %s2402_s14, %s2798_s14   ;;  %s2350_s13 = sphi %s2400_s13, %s2797_s13   ;;  %s2346_s12 = sphi %s2398_s12, %s2796_s12  }
   0x8   : > { %p61_p0 = scmp.ne.s32.totalorder %s2350_s13, %s2346_s12  ;;  %p2432_p1 = scmp.eq.s32.totalorder %s1582_s18, 0 }
   0x9   : > { %p2436_p2 = scmp.eq.s32.totalorder %s1582_s18, 3  ;;  %p147_p3 = scmp.eq.s32.totalorder %s1583_s19, 3 }
   0xa   : > { %p2442_p4 = por %p2432_p1, %p61_p0  ;;  %p1584_p5 = scmp.ge.s32.totalorder %s2366_s17, 1 }
   0xb   : > { %p2447_p6 = por %p147_p3, %p61_p0  ;;  %p154_p7 = scmp.lt.s32.totalorder %s2366_s17, 5 }
   0xc   : > { %s2368_s25 = smov [#allocation5]   ;;  %s39_s28 = sadd.s32 1, %s2362_s16 }
   0xd   : > { %s2788_s23 = scalar_select %p2447_p6, 1, 0 }
   0xe   : > { %p2452_p8 = pnand %p1584_p5, %p154_p7  ;;  %s170_s26 = sshll.u32 %s2368_s25, 4  ;;  %s171_s26 = int_to_ptr.vmem [resolvable:$true] %s170_s26 }
   0xf   : > { %s2239_s29 = scalar_lea.vmem %s171_s26, 2048  ;;  %p2247_p3 = scmp.lt.s32.totalorder %s171_s26, %s171_s26 }
  0x10   : > { %p2044_p9 = pneg %p2452_p8  ;;  %p2240_p12 = scmp.ne.s32.totalorder %s171_s26, %s2239_s29 }
  0x11   : > { %p2248_p5 = scmp.lt.s32.totalorder %s2239_s29, %s2239_s29 }
  0x12   : > { %p2460_p10 = pnand %p2044_p9, %p2432_p1 }
  0x13   : > { %p2249_p7 = por %p2248_p5, %p2247_p3 }
  0x14   : > { %p2230_p11 = pneg %p2460_p10 }
  0x16   : > { %p2242_p13 = pnand %p2240_p12, %p2230_p11 }
  0x18   : > { %p2243_p0 = pneg %p2242_p13 }
  0x1a   : > { %p2250_p6 = pnand %p2249_p7, %p2243_p0 }
  0x1c   : > { %2253 = shalt.err (!%p2250_p6)
}
  0x1d   : > { %s2369_s30 = smov 64   ;;  %s2370_s4 = smov 4  }
  0x1e   : > { %2047 = dma.hbm_to_vmem [thread:$0]  (!%p2460_p10), %s2781_s1, 2048, %s171_s26, [#allocation6], %s2369_s30, %s2369_s30, %s2370_s4  }
  0x1f   : > { %p41_p9 = scmp.ge.s32.totalorder %s39_s28, 4  ;;  %s48_s7 = sadd.s32 1, %s2354_s14 }
  0x20   : > { %p55_p6 = scmp.ne.s32.totalorder %s2354_s14, %s2350_s13  ;;  %p56_p11 = scmp.eq.s32.totalorder %s2366_s17, 0 }
  0x21   : > { %s2802_s28 = smov (%p41_p9, %s39_s28), 0  ;;  %p2057_p0 = scmp.lt.s32.totalorder %s2366_s17, 4 }
  0x22   : > { %p2478_p12 = por %p56_p11, %p55_p6  ;;  %p2484_p13 = por %p2436_p2, %p55_p6 }
  0x23   : > { %s43_s10 = ssub.s32 %s2362_s16, %s2802_s28  ;;  %s190_s11 = sand.u32 1, %s2354_s14  }
  0x24   : > { %s2792_s9 = scalar_select %p2484_p13, 1, 0 }
  0x25   : > { %p46_p10 = scmp.eq.s32.totalorder %s43_s10, 0  ;;  %s1588_s18 = sshll.u32 %s190_s11, 9 }
  0x26   : > { %s1747_s25 = sshll.u32 %s2362_s16, 13  ;;  %s194_s30 = scalar_lea.vmem [#allocation2], %s1588_s18 }
  0x27   : > { %s2493_s19 = scalar_select %p46_p10, %s2354_s14, %s48_s7  }
  0x28   : > { %s203_s29 = scalar_lea.hbm %s2780_s0, %s1747_s25  ;;  %s204_s4 = sshll.u32 %s194_s30, 4  ;;  %s205_s4 = int_to_ptr.vmem [resolvable:$true] %s204_s4 }
  0x29   : > { %p2501_p2 = pnand %p2057_p0, %p2478_p12  ;;  %s191_s5 = scalar_lea.sflag [#allocation3], %s190_s11 }
  0x2a   : > { %s2267_s6 = scalar_lea.vmem %s205_s4, 8192  ;;  %s2371_s7 = smov [#allocation2]  }
  0x2b   : > { %p2256_p3 = pneg %p2501_p2  ;;  %p2268_p5 = scmp.ne.s32.totalorder %s205_s4, %s2267_s6 }
  0x2c   : > { %s2272_s10 = sshll.u32 %s2371_s7, 4  ;;  %s2273_s10 = int_to_ptr.vmem [resolvable:$false] %s2272_s10 }
  0x2d   : > { %p2270_p7 = pnand %p2268_p5, %p2256_p3  ;;  %s2274_s25 = scalar_lea.vmem %s2273_s10, 16384 }
  0x2e   : > { %p2275_p6 = scmp.lt.s32.totalorder %s205_s4, %s2273_s10  ;;  %p2276_p11 = scmp.lt.s32.totalorder %s2274_s25, %s2267_s6 }
  0x2f   : > { %p2271_p9 = pneg %p2270_p7 }
  0x30   : > { %p2277_p10 = por %p2276_p11, %p2275_p6 }
  0x32   : > { %p2278_p13 = pnand %p2277_p10, %p2271_p9 }
  0x34   : > { %2281 = shalt.err (!%p2278_p13)
}
  0x35   : > { %s2372_s8 = smov 128   ;;  %s2373_s18 = smov 8  }
  0x36   : > { %2051 = dma.hbm_to_vmem [thread:$0]  (!%p2501_p2), %s203_s29, 8192, %s205_s4, %s191_s5, %s2372_s8, %s2372_s8, %s2373_s18  }
  0x37   : > { %216 = sbr.rel (%p2452_p8) target bundleno = 465 (0x1d1), region = 32  ;;  %s2512_s11 = sand.u32 (!%p2452_p8), 1, %s2350_s13  }
  0x38   : > { %s1593_s26 = sshll.u32 (!%p2452_p8), %s2512_s11, 9  ;;  %s219_s27 = scalar_lea.sflag (!%p2452_p8), [#allocation3], %s2512_s11 }
  0x39   : > { %s2516_s30 = scalar_lea.vmem (!%p2452_p8), [#allocation2], %s1593_s26 }
  0x3c   : > { %2333 = dma.done.wait (%p2442_p4), %s219_s27, 8192  }
  0x3d   : > { %2335 = vsyncadd (%p2442_p4), %s219_s27, 4294959104 }
  0x3e   : > { %2337 = dma.done.wait (%p2432_p1), [#allocation6], 2048  }
  0x3f   : > { %2339 = vsyncadd (%p2432_p1), [#allocation6], 4294965248  ;;  %v2374_v0 = vmov 0   ;;  %v2116_v1 = vld [vmem:[#allocation5 + $0x38] sm:$0xff]   ;;  %v2117_v2 = vld [vmem:[#allocation5 + $0x30] sm:$0xff]   ;;  %s1595_s24 = sshll.u32 %s2512_s11, 8 }
  0x40   : > { %779 = vmatprep.subr.bf16.mxu0 %v2374_v0  ;;  %2004 = vmatprep.subr.bf16.mxu1 %v2374_v0  ;;  %v2118_v3 = vld [vmem:[#allocation5 + $0x28] sm:$0xff]   ;;  %v2119_v4 = vld [vmem:[#allocation5 + $0x20] sm:$0xff]   ;;  %v2120_v5 = vld [vmem:[#allocation5 + $0x18] sm:$0xff]   ;;  %s2632_s29 = scalar_lea.vmem [#allocation7], %s1595_s24  ;;  %s1812_s4 = sshll.u32 %s2358_s15, 12 }
  0x41   : > { %780 = vmatpush1.bf16.msra.mxu0 %v2116_v1  ;;  %2020 = vmatpush1.bf16.msra.mxu1 %v2116_v1  ;;  %v2134_v6 = vld [vmem:[%s2516_s30 + $0x4] ss:$8 sps:$4 sm:$0xff]   ;;  %v2121_v7 = vld [vmem:[#allocation5 + $0x10] sm:$0xff]   ;;  %v2124_v11 = vld [vmem:[#allocation5 + $0x78] sm:$0xff]   ;;  %s1467_s21 = sshll.u32 %s2632_s29, 4  ;;  %s2729_s7 = scalar_lea.hbm %s2783_s3, %s1812_s4  ;;  %s2731_s21 = int_to_ptr.vmem [resolvable:$true] %s1467_s21 }
  0x42   : > { %781 = vmatprep.subr.bf16.mxu0 %v2374_v0  ;;  %2005 = vmatprep.subr.bf16.mxu1 %v2374_v0  ;;  %v2137_v8 = vld [vmem:[%s2516_s30 + $0x104] ss:$8 sps:$4 sm:$0xff]   ;;  %v2125_v12 = vld [vmem:[#allocation5 + $0x70] sm:$0xff]   ;;  %v2128_v15 = vld [vmem:[#allocation5 + $0x58] sm:$0xff]   ;;  %s1453_s15 = scalar_lea.sflag [#allocation4], %s2512_s11  ;;  %s2282_s10 = scalar_lea.vmem %s2731_s21, 4096 }
  0x43   : > { %811 = vmatprep.mubr.bf16.mxu0 %v2134_v6  ;;  %939 = vmatprep.mubr.bf16.mxu1 %v2137_v8  ;;  %v2122_v9 = vld [vmem:[#allocation5 + $0x8] sm:$0xff]   ;;  %v2123_v10 = vld [vmem:[#allocation5] sm:$0xff]   ;;  %v2129_v16 = vld [vmem:[#allocation5 + $0x50] sm:$0xff]   ;;  %p2283_p1 = scmp.ne.s32.totalorder %s2731_s21, %s2282_s10  ;;  %p2794_p4 = scmp.ne.s32.totalorder %s2792_s9, 0 }
  0x44   : > { %v2126_v13 = vld [vmem:[#allocation5 + $0x68] sm:$0xff]   ;;  %v2127_v14 = vld [vmem:[#allocation5 + $0x60] sm:$0xff]   ;;  %v2138_v21 = vld [vmem:[%s2516_s30 + $0x14] ss:$8 sps:$4 sm:$0xff]   ;;  %s2375_s25 = smov [#allocation7]  }
  0x45   : > { %782 = vmatpush1.bf16.msra.mxu0 %v2117_v2  ;;  %2021 = vmatpush1.bf16.msra.mxu1 %v2117_v2  ;;  %v2130_v17 = vld [vmem:[#allocation5 + $0x48] sm:$0xff]   ;;  %v2131_v18 = vld [vmem:[#allocation5 + $0x40] sm:$0xff]   ;;  %v2140_v22 = vld [vmem:[%s2516_s30 + $0x114] ss:$8 sps:$4 sm:$0xff]   ;;  %p2284_p8 = pnand %p2283_p1, %p2794_p4  ;;  %s2286_s8 = sshll.u32 %s2375_s25, 4  ;;  %s2287_s8 = int_to_ptr.vmem [resolvable:$false] %s2286_s8 }
  0x46   : > { %783 = vmatprep.subr.bf16.mxu0 %v2374_v0  ;;  %2006 = vmatprep.subr.bf16.mxu1 %v2374_v0  ;;  %v2132_v19 = vld [vmem:[%s2516_s30] ss:$8 sps:$4 sm:$0xff]   ;;  %v2142_v23 = vld [vmem:[%s2516_s30 + $0x10] ss:$8 sps:$4 sm:$0xff]   ;;  %v2144_v25 = vld [vmem:[%s2516_s30 + $0x24] ss:$8 sps:$4 sm:$0xff]   ;;  %p2289_p13 = scmp.lt.s32.totalorder %s2731_s21, %s2287_s8 }
  0x47   : > { %v2135_v20 = vld [vmem:[%s2516_s30 + $0x100] ss:$8 sps:$4 sm:$0xff]   ;;  %v2143_v24 = vld [vmem:[%s2516_s30 + $0x110] ss:$8 sps:$4 sm:$0xff]   ;;  %v2146_v26 = vld [vmem:[%s2516_s30 + $0x124] ss:$8 sps:$4 sm:$0xff]   ;;  %p2285_p12 = pneg %p2284_p8 }
  0x48   : > { %v2148_v27 = vld [vmem:[%s2516_s30 + $0x20] ss:$8 sps:$4 sm:$0xff]   ;;  %v2150_v29 = vld [vmem:[%s2516_s30 + $0x34] ss:$8 sps:$4 sm:$0xff]   ;;  %v2154_v31 = vld [vmem:[%s2516_s30 + $0x30] ss:$8 sps:$4 sm:$0xff]  }
  0x49   : > { %784 = vmatpush1.bf16.msra.mxu0 %v2118_v3  ;;  %2022 = vmatpush1.bf16.msra.mxu1 %v2118_v3  ;;  %v2149_v28 = vld [vmem:[%s2516_s30 + $0x120] ss:$8 sps:$4 sm:$0xff]   ;;  %v2152_v30 = vld [vmem:[%s2516_s30 + $0x134] ss:$8 sps:$4 sm:$0xff]   ;;  %v2155_v32 = vld [vmem:[%s2516_s30 + $0x130] ss:$8 sps:$4 sm:$0xff]  }
  0x4a   : > { %785 = vmatprep.subr.bf16.mxu0 %v2374_v0  ;;  %2007 = vmatprep.subr.bf16.mxu1 %v2374_v0  ;;  %v2156_v33 = vld [vmem:[%s2516_s30 + $0x44] ss:$8 sps:$4 sm:$0xff]   ;;  %v2160_v35 = vld [vmem:[%s2516_s30 + $0x40] ss:$8 sps:$4 sm:$0xff]   ;;  %v2162_v37 = vld [vmem:[%s2516_s30 + $0x54] ss:$8 sps:$4 sm:$0xff]  }
  0x4b   : > { %v2158_v34 = vld [vmem:[%s2516_s30 + $0x144] ss:$8 sps:$4 sm:$0xff]   ;;  %v2161_v36 = vld [vmem:[%s2516_s30 + $0x140] ss:$8 sps:$4 sm:$0xff]   ;;  %v2164_v38 = vld [vmem:[%s2516_s30 + $0x154] ss:$8 sps:$4 sm:$0xff]  }
  0x4c   : > { %v2166_v39 = vld [vmem:[%s2516_s30 + $0x50] ss:$8 sps:$4 sm:$0xff]   ;;  %v2168_v41 = vld [vmem:[%s2516_s30 + $0x64] ss:$8 sps:$4 sm:$0xff]   ;;  %v2172_v43 = vld [vmem:[%s2516_s30 + $0x60] ss:$8 sps:$4 sm:$0xff]  }
  0x4d   : > { %786 = vmatpush1.bf16.msra.mxu0 %v2119_v4  ;;  %2023 = vmatpush1.bf16.msra.mxu1 %v2119_v4  ;;  %v2167_v40 = vld [vmem:[%s2516_s30 + $0x150] ss:$8 sps:$4 sm:$0xff]   ;;  %v2170_v42 = vld [vmem:[%s2516_s30 + $0x164] ss:$8 sps:$4 sm:$0xff]   ;;  %v2173_v44 = vld [vmem:[%s2516_s30 + $0x160] ss:$8 sps:$4 sm:$0xff]  }
  0x4e   : > { %787 = vmatprep.subr.bf16.mxu0 %v2374_v0  ;;  %2008 = vmatprep.subr.bf16.mxu1 %v2374_v0  ;;  %v2174_v45 = vld [vmem:[%s2516_s30 + $0x74] ss:$8 sps:$4 sm:$0xff]   ;;  %v2178_v47 = vld [vmem:[%s2516_s30 + $0x70] ss:$8 sps:$4 sm:$0xff]   ;;  %v2180_v49 = vld [vmem:[%s2516_s30 + $0x84] ss:$8 sps:$4 sm:$0xff]  }
  0x4f   : > { %v2176_v46 = vld [vmem:[%s2516_s30 + $0x174] ss:$8 sps:$4 sm:$0xff]   ;;  %v2179_v48 = vld [vmem:[%s2516_s30 + $0x170] ss:$8 sps:$4 sm:$0xff]   ;;  %v2182_v50 = vld [vmem:[%s2516_s30 + $0x184] ss:$8 sps:$4 sm:$0xff]  }
  0x50   : > { %v2184_v51 = vld [vmem:[%s2516_s30 + $0x80] ss:$8 sps:$4 sm:$0xff]   ;;  %v2186_v53 = vld [vmem:[%s2516_s30 + $0x94] ss:$8 sps:$4 sm:$0xff]   ;;  %v2190_v55 = vld [vmem:[%s2516_s30 + $0x90] ss:$8 sps:$4 sm:$0xff]  }
  0x51   : > { %788 = vmatpush1.bf16.msra.mxu0 %v2120_v5  ;;  %2024 = vmatpush1.bf16.msra.mxu1 %v2120_v5  ;;  %v2185_v52 = vld [vmem:[%s2516_s30 + $0x180] ss:$8 sps:$4 sm:$0xff]   ;;  %v2188_v54 = vld [vmem:[%s2516_s30 + $0x194] ss:$8 sps:$4 sm:$0xff]   ;;  %v2191_v56 = vld [vmem:[%s2516_s30 + $0x190] ss:$8 sps:$4 sm:$0xff]  }
  0x52   : > { %789 = vmatprep.subr.bf16.mxu0 %v2374_v0  ;;  %2009 = vmatprep.subr.bf16.mxu1 %v2374_v0  ;;  %v2192_v57 = vld [vmem:[%s2516_s30 + $0xa4] ss:$8 sps:$4 sm:$0xff]   ;;  %v2196_v59 = vld [vmem:[%s2516_s30 + $0xa0] ss:$8 sps:$4 sm:$0xff]   ;;  %v2198_v61 = vld [vmem:[%s2516_s30 + $0xb4] ss:$8 sps:$4 sm:$0xff]  }
  0x53   : > { %v2194_v58 = vld [vmem:[%s2516_s30 + $0x1a4] ss:$8 sps:$4 sm:$0xff]   ;;  %v2197_v60 = vld [vmem:[%s2516_s30 + $0x1a0] ss:$8 sps:$4 sm:$0xff]   ;;  %v2200_v62 = vld [vmem:[%s2516_s30 + $0x1b4] ss:$8 sps:$4 sm:$0xff]  }
  0x54   : > { %v2202_v63 = vld [vmem:[%s2516_s30 + $0xb0] ss:$8 sps:$4 sm:$0xff]   ;;  %v2204_v1 = vld [vmem:[%s2516_s30 + $0xc4] ss:$8 sps:$4 sm:$0xff]   ;;  %v2208_v3 = vld [vmem:[%s2516_s30 + $0xc0] ss:$8 sps:$4 sm:$0xff]  }
  0x55   : > { %790 = vmatpush1.bf16.msra.mxu0 %v2121_v7  ;;  %2025 = vmatpush1.bf16.msra.mxu1 %v2121_v7  ;;  %v2206_v2 = vld [vmem:[%s2516_s30 + $0x1c4] ss:$8 sps:$4 sm:$0xff]   ;;  %v2209_v4 = vld [vmem:[%s2516_s30 + $0x1c0] ss:$8 sps:$4 sm:$0xff]   ;;  %v2210_v5 = vld [vmem:[%s2516_s30 + $0xd4] ss:$8 sps:$4 sm:$0xff]  }
  0x56   : > { %791 = vmatprep.subr.bf16.mxu0 %v2374_v0  ;;  %2010 = vmatprep.subr.bf16.mxu1 %v2374_v0  ;;  %v2212_v6 = vld [vmem:[%s2516_s30 + $0x1d4] ss:$8 sps:$4 sm:$0xff]   ;;  %v2214_v7 = vld [vmem:[%s2516_s30 + $0xd0] ss:$8 sps:$4 sm:$0xff]   ;;  %s2288_s18 = scalar_lea.vmem %s2287_s8, 8192 }
  0x57   : > { %v2215_v8 = vld [vmem:[%s2516_s30 + $0x1d0] ss:$8 sps:$4 sm:$0xff]   ;;  %p2290_p0 = scmp.lt.s32.totalorder %s2288_s18, %s2282_s10 }
  0x59   : > { %792 = vmatpush1.bf16.msra.mxu0 %v2122_v9  ;;  %2026 = vmatpush1.bf16.msra.mxu1 %v2122_v9  ;;  %v2216_v9 = vld [vmem:[%s2516_s30 + $0xe4] ss:$8 sps:$4 sm:$0xff]   ;;  %p2291_p2 = por %p2290_p0, %p2289_p13 }
  0x5a   : > { %793 = vmatprep.subr.bf16.mxu0 %v2374_v0  ;;  %2011 = vmatprep.subr.bf16.mxu1 %v2374_v0 }
  0x5b   : > { %p2292_p3 = pnand %p2291_p2, %p2285_p12 }
  0x5d   : > { %794 = vmatpush1.bf16.msra.mxu0 %v2123_v10  ;;  %2027 = vmatpush1.bf16.msra.mxu1 %v2123_v10  ;;  %v2218_v10 = vld [vmem:[%s2516_s30 + $0x1e4] ss:$8 sps:$4 sm:$0xff]  }
  0x5e   : > { %795 = vmatprep.subr.bf16.mxu0 %v2374_v0  ;;  %2012 = vmatprep.subr.bf16.mxu1 %v2374_v0 }
  0x61   : > { %796 = vmatpush2.bf16.msra.mxu0 %v2124_v11  ;;  %2028 = vmatpush2.bf16.msra.mxu1 %v2124_v11  ;;  %v2220_v11 = vld [vmem:[%s2516_s30 + $0xe0] ss:$8 sps:$4 sm:$0xff]  }
  0x62   : > { %797 = vmatprep.subr.bf16.mxu0 %v2374_v0  ;;  %2013 = vmatprep.subr.bf16.mxu1 %v2374_v0 }
  0x65   : > { %798 = vmatpush2.bf16.msra.mxu0 %v2125_v12  ;;  %2029 = vmatpush2.bf16.msra.mxu1 %v2125_v12  ;;  %v2221_v12 = vld [vmem:[%s2516_s30 + $0x1e0] ss:$8 sps:$4 sm:$0xff]  }
  0x66   : > { %799 = vmatprep.subr.bf16.mxu0 %v2374_v0  ;;  %2014 = vmatprep.subr.bf16.mxu1 %v2374_v0 }
  0x69   : > { %800 = vmatpush2.bf16.msra.mxu0 %v2126_v13  ;;  %2030 = vmatpush2.bf16.msra.mxu1 %v2126_v13  ;;  %v2222_v13 = vld [vmem:[%s2516_s30 + $0xf4] ss:$8 sps:$4 sm:$0xff]  }
  0x6a   : > { %801 = vmatprep.subr.bf16.mxu0 %v2374_v0  ;;  %2015 = vmatprep.subr.bf16.mxu1 %v2374_v0 }
  0x6d   : > { %802 = vmatpush2.bf16.msra.mxu0 %v2127_v14  ;;  %2031 = vmatpush2.bf16.msra.mxu1 %v2127_v14  ;;  %v2224_v14 = vld [vmem:[%s2516_s30 + $0x1f4] ss:$8 sps:$4 sm:$0xff]  }
  0x6e   : > { %803 = vmatprep.subr.bf16.mxu0 %v2374_v0  ;;  %2016 = vmatprep.subr.bf16.mxu1 %v2374_v0 }
  0x71   : > { %804 = vmatpush2.bf16.msra.mxu0 %v2128_v15  ;;  %2032 = vmatpush2.bf16.msra.mxu1 %v2128_v15  ;;  %v2226_v15 = vld [vmem:[%s2516_s30 + $0xf0] ss:$8 sps:$4 sm:$0xff]  }
  0x72   : > { %805 = vmatprep.subr.bf16.mxu0 %v2374_v0  ;;  %2017 = vmatprep.subr.bf16.mxu1 %v2374_v0 }
  0x75   : > { %806 = vmatpush2.bf16.msra.mxu0 %v2129_v16  ;;  %2033 = vmatpush2.bf16.msra.mxu1 %v2129_v16  ;;  %v2227_v16 = vld [vmem:[%s2516_s30 + $0x1f0] ss:$8 sps:$4 sm:$0xff]  }
  0x76   : > { %807 = vmatprep.subr.bf16.mxu0 %v2374_v0  ;;  %2018 = vmatprep.subr.bf16.mxu1 %v2374_v0 }
  0x79   : > { %808 = vmatpush2.bf16.msra.mxu0 %v2130_v17  ;;  %2034 = vmatpush2.bf16.msra.mxu1 %v2130_v17  ;;  %v2625_v17 = vld [vmem:[%s2782_s2] ss:$0 sm:$0xff] }
  0x7a   : > { %809 = vmatprep.subr.bf16.mxu0 %v2374_v0  ;;  %2019 = vmatprep.subr.bf16.mxu1 %v2374_v0  ;;  %v2203_v0 = vld [vmem:[%s2516_s30 + $0x1b0] ss:$8 sps:$4 sm:$0xff]  }
  0x7d   : > { %810 = vmatpush2.bf16.msra.mxu0 %v2131_v18  ;;  %2035 = vmatpush2.bf16.msra.mxu1 %v2131_v18 }
  0x80   : > { %812 = vmatmul.mubr.bf16.vlgmr.msra.gmra.mxu0 %v2132_v19  ;;  %940 = vmatmul.mubr.bf16.vlgmr.msra.gmra.mxu1 %v2135_v20 }
  0x81   : > { %819 = vmatprep.mubr.bf16.mxu0 %v2138_v21  ;;  %947 = vmatprep.mubr.bf16.mxu1 %v2140_v22 }
  0x88   : > { %820 = vmatmul.mubr.bf16.gmra.mxu0 %v2142_v23  ;;  %948 = vmatmul.mubr.bf16.gmra.mxu1 %v2143_v24 }
  0x89   : > { %827 = vmatprep.mubr.bf16.mxu0 %v2144_v25  ;;  %955 = vmatprep.mubr.bf16.mxu1 %v2146_v26 }
  0x90   : > { %828 = vmatmul.mubr.bf16.gmra.mxu0 %v2148_v27  ;;  %956 = vmatmul.mubr.bf16.gmra.mxu1 %v2149_v28 }
  0x91   : > { %835 = vmatprep.mubr.bf16.mxu0 %v2150_v29  ;;  %963 = vmatprep.mubr.bf16.mxu1 %v2152_v30 }
  0x98   : > { %836 = vmatmul.mubr.bf16.gmra.mxu0 %v2154_v31  ;;  %964 = vmatmul.mubr.bf16.gmra.mxu1 %v2155_v32 }
  0x99   : > { %843 = vmatprep.mubr.bf16.mxu0 %v2156_v33  ;;  %971 = vmatprep.mubr.bf16.mxu1 %v2158_v34 }
  0xa0   : > { %844 = vmatmul.mubr.bf16.gmra.mxu0 %v2160_v35  ;;  %972 = vmatmul.mubr.bf16.gmra.mxu1 %v2161_v36 }
  0xa1   : > { %851 = vmatprep.mubr.bf16.mxu0 %v2162_v37  ;;  %979 = vmatprep.mubr.bf16.mxu1 %v2164_v38 }
  0xa8   : > { %852 = vmatmul.mubr.bf16.gmra.mxu0 %v2166_v39  ;;  %980 = vmatmul.mubr.bf16.gmra.mxu1 %v2167_v40 }
  0xa9   : > { %859 = vmatprep.mubr.bf16.mxu0 %v2168_v41  ;;  %987 = vmatprep.mubr.bf16.mxu1 %v2170_v42 }
  0xb0   : > { %860 = vmatmul.mubr.bf16.gmra.mxu0 %v2172_v43  ;;  %988 = vmatmul.mubr.bf16.gmra.mxu1 %v2173_v44 }
  0xb1   : > { %867 = vmatprep.mubr.bf16.mxu0 %v2174_v45  ;;  %995 = vmatprep.mubr.bf16.mxu1 %v2176_v46 }
  0xb8   : > { %868 = vmatmul.mubr.bf16.gmra.mxu0 %v2178_v47  ;;  %996 = vmatmul.mubr.bf16.gmra.mxu1 %v2179_v48 }
  0xb9   : > { %875 = vmatprep.mubr.bf16.mxu0 %v2180_v49  ;;  %1003 = vmatprep.mubr.bf16.mxu1 %v2182_v50 }
  0xc0   : > { %876 = vmatmul.mubr.bf16.gmra.mxu0 %v2184_v51  ;;  %1004 = vmatmul.mubr.bf16.gmra.mxu1 %v2185_v52 }
  0xc1   : > { %883 = vmatprep.mubr.bf16.mxu0 %v2186_v53  ;;  %1011 = vmatprep.mubr.bf16.mxu1 %v2188_v54 }
  0xc8   : > { %884 = vmatmul.mubr.bf16.gmra.mxu0 %v2190_v55  ;;  %1012 = vmatmul.mubr.bf16.gmra.mxu1 %v2191_v56 }
  0xc9   : > { %891 = vmatprep.mubr.bf16.mxu0 %v2192_v57  ;;  %1019 = vmatprep.mubr.bf16.mxu1 %v2194_v58 }
  0xd0   : > { %892 = vmatmul.mubr.bf16.gmra.mxu0 %v2196_v59  ;;  %1020 = vmatmul.mubr.bf16.gmra.mxu1 %v2197_v60 }
  0xd1   : > { %899 = vmatprep.mubr.bf16.mxu0 %v2198_v61  ;;  %1027 = vmatprep.mubr.bf16.mxu1 %v2200_v62 }
  0xd8   : > { %900 = vmatmul.mubr.bf16.gmra.mxu0 %v2202_v63  ;;  %1028 = vmatmul.mubr.bf16.gmra.mxu1 %v2203_v0 }
  0xd9   : > { %907 = vmatprep.mubr.bf16.mxu0 %v2204_v1  ;;  %1035 = vmatprep.mubr.bf16.mxu1 %v2206_v2 }
  0xe0   : > { %908 = vmatmul.mubr.bf16.gmra.mxu0 %v2208_v3  ;;  %1036 = vmatmul.mubr.bf16.gmra.mxu1 %v2209_v4 }
  0xe1   : > { %915 = vmatprep.mubr.bf16.mxu0 %v2210_v5  ;;  %1043 = vmatprep.mubr.bf16.mxu1 %v2212_v6 }
  0xe8   : > { %916 = vmatmul.mubr.bf16.gmra.mxu0 %v2214_v7  ;;  %1044 = vmatmul.mubr.bf16.gmra.mxu1 %v2215_v8 }
  0xe9   : > { %923 = vmatprep.mubr.bf16.mxu0 %v2216_v9  ;;  %1051 = vmatprep.mubr.bf16.mxu1 %v2218_v10 }
  0xf0   : > { %924 = vmatmul.mubr.bf16.gmra.mxu0 %v2220_v11  ;;  %1052 = vmatmul.mubr.bf16.gmra.mxu1 %v2221_v12 }
  0xf1   : > { %931 = vmatprep.mubr.bf16.mxu0 %v2222_v13  ;;  %1059 = vmatprep.mubr.bf16.mxu1 %v2224_v14 }
  0xf8   : > { %932 = vmatmul.mubr.bf16.gmra.mxu0 %v2226_v15  ;;  %1060 = vmatmul.mubr.bf16.gmra.mxu1 %v2227_v16 }
 0x140   : > { %v813_v18 = vpop.f32.mrf.mxu0  ;;  %v941_v19 = vpop.f32.mrf.mxu1 }
 0x141   : > { %v814_v22 = vadd.f32 %v2625_v17, %v813_v18  ;;  %v942_v23 = vadd.f32 %v2625_v17, %v941_v19 }
 0x142   : > { %v815_v20 = vpop.f32.mrf.mxu0  ;;  %v943_v21 = vpop.f32.mrf.mxu1 }
 0x143   : > { %v1068_v30 = vmax.f32 %v814_v22, 0.0  ;;  %v1100_v31 = vmax.f32 %v942_v23, 0.0 }
 0x144   : > { %v816_v24 = vpop.f32.mrf.mxu0  ;;  %v944_v25 = vpop.f32.mrf.mxu1 }
 0x145   : > { %v817_v26 = vadd.f32 %v2625_v17, %v816_v24  ;;  %v945_v27 = vadd.f32 %v2625_v17, %v944_v25 }
 0x146   : > { %v818_v28 = vpop.f32.mrf.mxu0  ;;  %v946_v29 = vpop.f32.mrf.mxu1 }
 0x147   : > { %v1069_v32 = vmax.f32 %v817_v26, 0.0  ;;  %v1101_v33 = vmax.f32 %v945_v27, 0.0 }
 0x148   : > { %v821_v34 = vpop.f32.mrf.mxu0  ;;  %v949_v35 = vpop.f32.mrf.mxu1 }
 0x149   : > { %v1816_v36 = vpack.c.bf16 %v1069_v32, %v1068_v30  ;;  %v1896_v37 = vpack.c.bf16 %v1101_v33, %v1100_v31  ;;  %v822_v40 = vadd.f32 %v2625_v17, %v821_v34  ;;  %v950_v41 = vadd.f32 %v2625_v17, %v949_v35 }
 0x14a   : > { %v823_v38 = vpop.f32.mrf.mxu0  ;;  %v951_v39 = vpop.f32.mrf.mxu1 }
 0x14b   : > { %1817 = vst [vmem:[%s2632_s29] sm:$0xff] %v1816_v36   ;;  %1988 = vst [vmem:[%s2632_s29 + $0x80] sm:$0xff] %v1896_v37   ;;  %v1070_v48 = vmax.f32 %v822_v40, 0.0  ;;  %v1102_v49 = vmax.f32 %v950_v41, 0.0 }
 0x14c   : > { %v824_v42 = vpop.f32.mrf.mxu0  ;;  %v952_v43 = vpop.f32.mrf.mxu1 }
 0x14d   : > { %v825_v44 = vadd.f32 %v2625_v17, %v824_v42  ;;  %v953_v45 = vadd.f32 %v2625_v17, %v952_v43 }
 0x14e   : > { %v826_v46 = vpop.f32.mrf.mxu0  ;;  %v954_v47 = vpop.f32.mrf.mxu1 }
 0x14f   : > { %v1071_v50 = vmax.f32 %v825_v44, 0.0  ;;  %v1103_v51 = vmax.f32 %v953_v45, 0.0 }
 0x150   : > { %v829_v52 = vpop.f32.mrf.mxu0  ;;  %v957_v53 = vpop.f32.mrf.mxu1 }
 0x151   : > { %v1821_v54 = vpack.c.bf16 %v1071_v50, %v1070_v48  ;;  %v1901_v55 = vpack.c.bf16 %v1103_v51, %v1102_v49  ;;  %v830_v58 = vadd.f32 %v2625_v17, %v829_v52  ;;  %v958_v59 = vadd.f32 %v2625_v17, %v957_v53 }
 0x152   : > { %v831_v56 = vpop.f32.mrf.mxu0  ;;  %v959_v57 = vpop.f32.mrf.mxu1 }
 0x153   : > { %1973 = vst [vmem:[%s2632_s29 + $0x8] sm:$0xff] %v1821_v54   ;;  %1989 = vst [vmem:[%s2632_s29 + $0x88] sm:$0xff] %v1901_v55   ;;  %v1072_v2 = vmax.f32 %v830_v58, 0.0  ;;  %v1104_v3 = vmax.f32 %v958_v59, 0.0 }
 0x154   : > { %v832_v60 = vpop.f32.mrf.mxu0  ;;  %v960_v61 = vpop.f32.mrf.mxu1 }
 0x155   : > { %v833_v62 = vadd.f32 %v2625_v17, %v832_v60  ;;  %v961_v63 = vadd.f32 %v2625_v17, %v960_v61 }
 0x156   : > { %v834_v0 = vpop.f32.mrf.mxu0  ;;  %v962_v1 = vpop.f32.mrf.mxu1 }
 0x157   : > { %v1073_v4 = vmax.f32 %v833_v62, 0.0  ;;  %v1105_v5 = vmax.f32 %v961_v63, 0.0 }
 0x158   : > { %v837_v6 = vpop.f32.mrf.mxu0  ;;  %v965_v7 = vpop.f32.mrf.mxu1 }
 0x159   : > { %v1826_v8 = vpack.c.bf16 %v1073_v4, %v1072_v2  ;;  %v1906_v9 = vpack.c.bf16 %v1105_v5, %v1104_v3  ;;  %v838_v12 = vadd.f32 %v2625_v17, %v837_v6  ;;  %v966_v13 = vadd.f32 %v2625_v17, %v965_v7 }
 0x15a   : > { %v839_v10 = vpop.f32.mrf.mxu0  ;;  %v967_v11 = vpop.f32.mrf.mxu1 }
 0x15b   : > { %1974 = vst [vmem:[%s2632_s29 + $0x10] sm:$0xff] %v1826_v8   ;;  %1990 = vst [vmem:[%s2632_s29 + $0x90] sm:$0xff] %v1906_v9   ;;  %v1074_v21 = vmax.f32 %v838_v12, 0.0  ;;  %v1106_v22 = vmax.f32 %v966_v13, 0.0 }
 0x15c   : > { %v840_v14 = vpop.f32.mrf.mxu0  ;;  %v968_v15 = vpop.f32.mrf.mxu1 }
 0x15d   : > { %v841_v16 = vadd.f32 %v2625_v17, %v840_v14  ;;  %v969_v18 = vadd.f32 %v2625_v17, %v968_v15 }
 0x15e   : > { %v842_v19 = vpop.f32.mrf.mxu0  ;;  %v970_v20 = vpop.f32.mrf.mxu1 }
 0x15f   : > { %v1075_v23 = vmax.f32 %v841_v16, 0.0  ;;  %v1107_v24 = vmax.f32 %v969_v18, 0.0 }
 0x160   : > { %v845_v25 = vpop.f32.mrf.mxu0  ;;  %v973_v26 = vpop.f32.mrf.mxu1 }
 0x161   : > { %v1831_v27 = vpack.c.bf16 %v1075_v23, %v1074_v21  ;;  %v1911_v28 = vpack.c.bf16 %v1107_v24, %v1106_v22  ;;  %v846_v31 = vadd.f32 %v2625_v17, %v845_v25  ;;  %v974_v32 = vadd.f32 %v2625_v17, %v973_v26 }
 0x162   : > { %v847_v29 = vpop.f32.mrf.mxu0  ;;  %v975_v30 = vpop.f32.mrf.mxu1 }
 0x163   : > { %1975 = vst [vmem:[%s2632_s29 + $0x18] sm:$0xff] %v1831_v27   ;;  %1991 = vst [vmem:[%s2632_s29 + $0x98] sm:$0xff] %v1911_v28   ;;  %v1076_v39 = vmax.f32 %v846_v31, 0.0  ;;  %v1108_v40 = vmax.f32 %v974_v32, 0.0 }
 0x164   : > { %v848_v33 = vpop.f32.mrf.mxu0  ;;  %v976_v34 = vpop.f32.mrf.mxu1 }
 0x165   : > { %v849_v35 = vadd.f32 %v2625_v17, %v848_v33  ;;  %v977_v36 = vadd.f32 %v2625_v17, %v976_v34 }
 0x166   : > { %v850_v37 = vpop.f32.mrf.mxu0  ;;  %v978_v38 = vpop.f32.mrf.mxu1 }
 0x167   : > { %v1077_v41 = vmax.f32 %v849_v35, 0.0  ;;  %v1109_v42 = vmax.f32 %v977_v36, 0.0 }
 0x168   : > { %v853_v43 = vpop.f32.mrf.mxu0  ;;  %v981_v44 = vpop.f32.mrf.mxu1 }
 0x169   : > { %v1836_v45 = vpack.c.bf16 %v1077_v41, %v1076_v39  ;;  %v1916_v46 = vpack.c.bf16 %v1109_v42, %v1108_v40  ;;  %v854_v49 = vadd.f32 %v2625_v17, %v853_v43  ;;  %v982_v50 = vadd.f32 %v2625_v17, %v981_v44 }
 0x16a   : > { %v855_v47 = vpop.f32.mrf.mxu0  ;;  %v983_v48 = vpop.f32.mrf.mxu1 }
 0x16b   : > { %1976 = vst [vmem:[%s2632_s29 + $0x20] sm:$0xff] %v1836_v45   ;;  %1992 = vst [vmem:[%s2632_s29 + $0xa0] sm:$0xff] %v1916_v46   ;;  %v1078_v57 = vmax.f32 %v854_v49, 0.0  ;;  %v1110_v58 = vmax.f32 %v982_v50, 0.0 }
 0x16c   : > { %v856_v51 = vpop.f32.mrf.mxu0  ;;  %v984_v52 = vpop.f32.mrf.mxu1 }
 0x16d   : > { %v857_v53 = vadd.f32 %v2625_v17, %v856_v51  ;;  %v985_v54 = vadd.f32 %v2625_v17, %v984_v52 }
 0x16e   : > { %v858_v55 = vpop.f32.mrf.mxu0  ;;  %v986_v56 = vpop.f32.mrf.mxu1 }
 0x16f   : > { %v1079_v59 = vmax.f32 %v857_v53, 0.0  ;;  %v1111_v60 = vmax.f32 %v985_v54, 0.0 }
 0x170   : > { %v861_v61 = vpop.f32.mrf.mxu0  ;;  %v989_v62 = vpop.f32.mrf.mxu1 }
 0x171   : > { %v1841_v63 = vpack.c.bf16 %v1079_v59, %v1078_v57  ;;  %v1921_v0 = vpack.c.bf16 %v1111_v60, %v1110_v58  ;;  %v862_v3 = vadd.f32 %v2625_v17, %v861_v61  ;;  %v990_v4 = vadd.f32 %v2625_v17, %v989_v62 }
 0x172   : > { %v863_v1 = vpop.f32.mrf.mxu0  ;;  %v991_v2 = vpop.f32.mrf.mxu1 }
 0x173   : > { %1977 = vst [vmem:[%s2632_s29 + $0x28] sm:$0xff] %v1841_v63   ;;  %1993 = vst [vmem:[%s2632_s29 + $0xa8] sm:$0xff] %v1921_v0   ;;  %v1080_v11 = vmax.f32 %v862_v3, 0.0  ;;  %v1112_v12 = vmax.f32 %v990_v4, 0.0 }
 0x174   : > { %v864_v5 = vpop.f32.mrf.mxu0  ;;  %v992_v6 = vpop.f32.mrf.mxu1 }
 0x175   : > { %v865_v7 = vadd.f32 %v2625_v17, %v864_v5  ;;  %v993_v8 = vadd.f32 %v2625_v17, %v992_v6 }
 0x176   : > { %v866_v9 = vpop.f32.mrf.mxu0  ;;  %v994_v10 = vpop.f32.mrf.mxu1 }
 0x177   : > { %v1081_v13 = vmax.f32 %v865_v7, 0.0  ;;  %v1113_v14 = vmax.f32 %v993_v8, 0.0 }
 0x178   : > { %v869_v15 = vpop.f32.mrf.mxu0  ;;  %v997_v16 = vpop.f32.mrf.mxu1 }
 0x179   : > { %v1846_v18 = vpack.c.bf16 %v1081_v13, %v1080_v11  ;;  %v1926_v19 = vpack.c.bf16 %v1113_v14, %v1112_v12  ;;  %v870_v22 = vadd.f32 %v2625_v17, %v869_v15  ;;  %v998_v23 = vadd.f32 %v2625_v17, %v997_v16 }
 0x17a   : > { %v871_v20 = vpop.f32.mrf.mxu0  ;;  %v999_v21 = vpop.f32.mrf.mxu1 }
 0x17b   : > { %1978 = vst [vmem:[%s2632_s29 + $0x30] sm:$0xff] %v1846_v18   ;;  %1994 = vst [vmem:[%s2632_s29 + $0xb0] sm:$0xff] %v1926_v19   ;;  %v1082_v30 = vmax.f32 %v870_v22, 0.0  ;;  %v1114_v31 = vmax.f32 %v998_v23, 0.0 }
 0x17c   : > { %v872_v24 = vpop.f32.mrf.mxu0  ;;  %v1000_v25 = vpop.f32.mrf.mxu1 }
 0x17d   : > { %v873_v26 = vadd.f32 %v2625_v17, %v872_v24  ;;  %v1001_v27 = vadd.f32 %v2625_v17, %v1000_v25 }
 0x17e   : > { %v874_v28 = vpop.f32.mrf.mxu0  ;;  %v1002_v29 = vpop.f32.mrf.mxu1 }
 0x17f   : > { %v1083_v32 = vmax.f32 %v873_v26, 0.0  ;;  %v1115_v33 = vmax.f32 %v1001_v27, 0.0 }
 0x180   : > { %v877_v34 = vpop.f32.mrf.mxu0  ;;  %v1005_v35 = vpop.f32.mrf.mxu1 }
 0x181   : > { %v1851_v36 = vpack.c.bf16 %v1083_v32, %v1082_v30  ;;  %v1931_v37 = vpack.c.bf16 %v1115_v33, %v1114_v31  ;;  %v878_v40 = vadd.f32 %v2625_v17, %v877_v34  ;;  %v1006_v41 = vadd.f32 %v2625_v17, %v1005_v35 }
 0x182   : > { %v879_v38 = vpop.f32.mrf.mxu0  ;;  %v1007_v39 = vpop.f32.mrf.mxu1 }
 0x183   : > { %1979 = vst [vmem:[%s2632_s29 + $0x38] sm:$0xff] %v1851_v36   ;;  %1995 = vst [vmem:[%s2632_s29 + $0xb8] sm:$0xff] %v1931_v37   ;;  %v1084_v48 = vmax.f32 %v878_v40, 0.0  ;;  %v1116_v49 = vmax.f32 %v1006_v41, 0.0 }
 0x184   : > { %v880_v42 = vpop.f32.mrf.mxu0  ;;  %v1008_v43 = vpop.f32.mrf.mxu1 }
 0x185   : > { %v881_v44 = vadd.f32 %v2625_v17, %v880_v42  ;;  %v1009_v45 = vadd.f32 %v2625_v17, %v1008_v43 }
 0x186   : > { %v882_v46 = vpop.f32.mrf.mxu0  ;;  %v1010_v47 = vpop.f32.mrf.mxu1 }
 0x187   : > { %v1085_v50 = vmax.f32 %v881_v44, 0.0  ;;  %v1117_v51 = vmax.f32 %v1009_v45, 0.0 }
 0x188   : > { %v885_v52 = vpop.f32.mrf.mxu0  ;;  %v1013_v53 = vpop.f32.mrf.mxu1 }
 0x189   : > { %v1856_v54 = vpack.c.bf16 %v1085_v50, %v1084_v48  ;;  %v1936_v55 = vpack.c.bf16 %v1117_v51, %v1116_v49  ;;  %v886_v58 = vadd.f32 %v2625_v17, %v885_v52  ;;  %v1014_v59 = vadd.f32 %v2625_v17, %v1013_v53 }
 0x18a   : > { %v887_v56 = vpop.f32.mrf.mxu0  ;;  %v1015_v57 = vpop.f32.mrf.mxu1 }
 0x18b   : > { %1980 = vst [vmem:[%s2632_s29 + $0x40] sm:$0xff] %v1856_v54   ;;  %1996 = vst [vmem:[%s2632_s29 + $0xc0] sm:$0xff] %v1936_v55   ;;  %v1086_v2 = vmax.f32 %v886_v58, 0.0  ;;  %v1118_v3 = vmax.f32 %v1014_v59, 0.0 }
 0x18c   : > { %v888_v60 = vpop.f32.mrf.mxu0  ;;  %v1016_v61 = vpop.f32.mrf.mxu1 }
 0x18d   : > { %v889_v62 = vadd.f32 %v2625_v17, %v888_v60  ;;  %v1017_v63 = vadd.f32 %v2625_v17, %v1016_v61 }
 0x18e   : > { %v890_v0 = vpop.f32.mrf.mxu0  ;;  %v1018_v1 = vpop.f32.mrf.mxu1 }
 0x18f   : > { %v1087_v4 = vmax.f32 %v889_v62, 0.0  ;;  %v1119_v5 = vmax.f32 %v1017_v63, 0.0 }
 0x190   : > { %v893_v6 = vpop.f32.mrf.mxu0  ;;  %v1021_v7 = vpop.f32.mrf.mxu1 }
 0x191   : > { %v1861_v8 = vpack.c.bf16 %v1087_v4, %v1086_v2  ;;  %v1941_v9 = vpack.c.bf16 %v1119_v5, %v1118_v3  ;;  %v894_v12 = vadd.f32 %v2625_v17, %v893_v6  ;;  %v1022_v13 = vadd.f32 %v2625_v17, %v1021_v7 }
 0x192   : > { %v895_v10 = vpop.f32.mrf.mxu0  ;;  %v1023_v11 = vpop.f32.mrf.mxu1 }
 0x193   : > { %1981 = vst [vmem:[%s2632_s29 + $0x48] sm:$0xff] %v1861_v8   ;;  %1997 = vst [vmem:[%s2632_s29 + $0xc8] sm:$0xff] %v1941_v9   ;;  %v1088_v21 = vmax.f32 %v894_v12, 0.0  ;;  %v1120_v22 = vmax.f32 %v1022_v13, 0.0 }
 0x194   : > { %v896_v14 = vpop.f32.mrf.mxu0  ;;  %v1024_v15 = vpop.f32.mrf.mxu1 }
 0x195   : > { %v897_v16 = vadd.f32 %v2625_v17, %v896_v14  ;;  %v1025_v18 = vadd.f32 %v2625_v17, %v1024_v15 }
 0x196   : > { %v898_v19 = vpop.f32.mrf.mxu0  ;;  %v1026_v20 = vpop.f32.mrf.mxu1 }
 0x197   : > { %v1089_v23 = vmax.f32 %v897_v16, 0.0  ;;  %v1121_v24 = vmax.f32 %v1025_v18, 0.0 }
 0x198   : > { %v901_v25 = vpop.f32.mrf.mxu0  ;;  %v1029_v26 = vpop.f32.mrf.mxu1 }
 0x199   : > { %v1866_v27 = vpack.c.bf16 %v1089_v23, %v1088_v21  ;;  %v1946_v28 = vpack.c.bf16 %v1121_v24, %v1120_v22  ;;  %v902_v31 = vadd.f32 %v2625_v17, %v901_v25  ;;  %v1030_v32 = vadd.f32 %v2625_v17, %v1029_v26 }
 0x19a   : > { %v903_v29 = vpop.f32.mrf.mxu0  ;;  %v1031_v30 = vpop.f32.mrf.mxu1 }
 0x19b   : > { %1982 = vst [vmem:[%s2632_s29 + $0x50] sm:$0xff] %v1866_v27   ;;  %1998 = vst [vmem:[%s2632_s29 + $0xd0] sm:$0xff] %v1946_v28   ;;  %v1090_v39 = vmax.f32 %v902_v31, 0.0  ;;  %v1122_v40 = vmax.f32 %v1030_v32, 0.0 }
 0x19c   : > { %v904_v33 = vpop.f32.mrf.mxu0  ;;  %v1032_v34 = vpop.f32.mrf.mxu1 }
 0x19d   : > { %v905_v35 = vadd.f32 %v2625_v17, %v904_v33  ;;  %v1033_v36 = vadd.f32 %v2625_v17, %v1032_v34 }
 0x19e   : > { %v906_v37 = vpop.f32.mrf.mxu0  ;;  %v1034_v38 = vpop.f32.mrf.mxu1 }
 0x19f   : > { %v1091_v41 = vmax.f32 %v905_v35, 0.0  ;;  %v1123_v42 = vmax.f32 %v1033_v36, 0.0 }
 0x1a0   : > { %v909_v43 = vpop.f32.mrf.mxu0  ;;  %v1037_v44 = vpop.f32.mrf.mxu1 }
 0x1a1   : > { %v1871_v45 = vpack.c.bf16 %v1091_v41, %v1090_v39  ;;  %v1951_v46 = vpack.c.bf16 %v1123_v42, %v1122_v40  ;;  %v910_v49 = vadd.f32 %v2625_v17, %v909_v43  ;;  %v1038_v50 = vadd.f32 %v2625_v17, %v1037_v44 }
 0x1a2   : > { %v911_v47 = vpop.f32.mrf.mxu0  ;;  %v1039_v48 = vpop.f32.mrf.mxu1 }
 0x1a3   : > { %1983 = vst [vmem:[%s2632_s29 + $0x58] sm:$0xff] %v1871_v45   ;;  %1999 = vst [vmem:[%s2632_s29 + $0xd8] sm:$0xff] %v1951_v46   ;;  %v1092_v57 = vmax.f32 %v910_v49, 0.0  ;;  %v1124_v58 = vmax.f32 %v1038_v50, 0.0 }
 0x1a4   : > { %v912_v51 = vpop.f32.mrf.mxu0  ;;  %v1040_v52 = vpop.f32.mrf.mxu1 }
 0x1a5   : > { %v913_v53 = vadd.f32 %v2625_v17, %v912_v51  ;;  %v1041_v54 = vadd.f32 %v2625_v17, %v1040_v52 }
 0x1a6   : > { %v914_v55 = vpop.f32.mrf.mxu0  ;;  %v1042_v56 = vpop.f32.mrf.mxu1 }
 0x1a7   : > { %v1093_v59 = vmax.f32 %v913_v53, 0.0  ;;  %v1125_v60 = vmax.f32 %v1041_v54, 0.0 }
 0x1a8   : > { %v917_v61 = vpop.f32.mrf.mxu0  ;;  %v1045_v62 = vpop.f32.mrf.mxu1 }
 0x1a9   : > { %v1876_v63 = vpack.c.bf16 %v1093_v59, %v1092_v57  ;;  %v1956_v0 = vpack.c.bf16 %v1125_v60, %v1124_v58  ;;  %v918_v3 = vadd.f32 %v2625_v17, %v917_v61  ;;  %v1046_v4 = vadd.f32 %v2625_v17, %v1045_v62 }
 0x1aa   : > { %v919_v1 = vpop.f32.mrf.mxu0  ;;  %v1047_v2 = vpop.f32.mrf.mxu1 }
 0x1ab   : > { %1984 = vst [vmem:[%s2632_s29 + $0x60] sm:$0xff] %v1876_v63   ;;  %2000 = vst [vmem:[%s2632_s29 + $0xe0] sm:$0xff] %v1956_v0   ;;  %v1094_v11 = vmax.f32 %v918_v3, 0.0  ;;  %v1126_v12 = vmax.f32 %v1046_v4, 0.0 }
 0x1ac   : > { %v920_v5 = vpop.f32.mrf.mxu0  ;;  %v1048_v6 = vpop.f32.mrf.mxu1 }
 0x1ad   : > { %v921_v7 = vadd.f32 %v2625_v17, %v920_v5  ;;  %v1049_v8 = vadd.f32 %v2625_v17, %v1048_v6 }
 0x1ae   : > { %v922_v9 = vpop.f32.mrf.mxu0  ;;  %v1050_v10 = vpop.f32.mrf.mxu1 }
 0x1af   : > { %v1095_v13 = vmax.f32 %v921_v7, 0.0  ;;  %v1127_v14 = vmax.f32 %v1049_v8, 0.0 }
 0x1b0   : > { %v925_v15 = vpop.f32.mrf.mxu0  ;;  %v1053_v16 = vpop.f32.mrf.mxu1 }
 0x1b1   : > { %v1881_v18 = vpack.c.bf16 %v1095_v13, %v1094_v11  ;;  %v1961_v19 = vpack.c.bf16 %v1127_v14, %v1126_v12  ;;  %v926_v22 = vadd.f32 %v2625_v17, %v925_v15  ;;  %v1054_v23 = vadd.f32 %v2625_v17, %v1053_v16 }
 0x1b2   : > { %v927_v20 = vpop.f32.mrf.mxu0  ;;  %v1055_v21 = vpop.f32.mrf.mxu1 }
 0x1b3   : > { %1985 = vst [vmem:[%s2632_s29 + $0x68] sm:$0xff] %v1881_v18   ;;  %2001 = vst [vmem:[%s2632_s29 + $0xe8] sm:$0xff] %v1961_v19   ;;  %v1096_v30 = vmax.f32 %v926_v22, 0.0  ;;  %v1128_v31 = vmax.f32 %v1054_v23, 0.0 }
 0x1b4   : > { %v928_v24 = vpop.f32.mrf.mxu0  ;;  %v1056_v25 = vpop.f32.mrf.mxu1 }
 0x1b5   : > { %v929_v26 = vadd.f32 %v2625_v17, %v928_v24  ;;  %v1057_v27 = vadd.f32 %v2625_v17, %v1056_v25 }
 0x1b6   : > { %v930_v28 = vpop.f32.mrf.mxu0  ;;  %v1058_v29 = vpop.f32.mrf.mxu1 }
 0x1b7   : > { %v1097_v32 = vmax.f32 %v929_v26, 0.0  ;;  %v1129_v33 = vmax.f32 %v1057_v27, 0.0 }
 0x1b8   : > { %v933_v34 = vpop.f32.mrf.mxu0  ;;  %v1061_v35 = vpop.f32.mrf.mxu1 }
 0x1b9   : > { %v1886_v36 = vpack.c.bf16 %v1097_v32, %v1096_v30  ;;  %v1966_v37 = vpack.c.bf16 %v1129_v33, %v1128_v31  ;;  %v934_v40 = vadd.f32 %v2625_v17, %v933_v34  ;;  %v1062_v41 = vadd.f32 %v2625_v17, %v1061_v35 }
 0x1ba   : > { %v935_v38 = vpop.f32.mrf.mxu0  ;;  %v1063_v39 = vpop.f32.mrf.mxu1 }
 0x1bb   : > { %1986 = vst [vmem:[%s2632_s29 + $0x70] sm:$0xff] %v1886_v36   ;;  %2002 = vst [vmem:[%s2632_s29 + $0xf0] sm:$0xff] %v1966_v37   ;;  %v1098_v48 = vmax.f32 %v934_v40, 0.0  ;;  %v1130_v49 = vmax.f32 %v1062_v41, 0.0 }
 0x1bc   : > { %v936_v42 = vpop.f32.mrf.mxu0  ;;  %v1064_v43 = vpop.f32.mrf.mxu1 }
 0x1bd   : > { %v937_v44 = vadd.f32 %v2625_v17, %v936_v42  ;;  %v1065_v45 = vadd.f32 %v2625_v17, %v1064_v43 }
 0x1be   : > { %v938_v46 = vpop.f32.mrf.mxu0  ;;  %v1066_v47 = vpop.f32.mrf.mxu1 }
 0x1bf   : > { %v1099_v50 = vmax.f32 %v937_v44, 0.0  ;;  %v1131_v51 = vmax.f32 %v1065_v45, 0.0 }
 0x1c1   : > { %v1891_v17 = vpack.c.bf16 %v1099_v50, %v1098_v48  ;;  %v1971_v52 = vpack.c.bf16 %v1131_v51, %v1130_v49 }
 0x1c3   : > { %1987 = vst [vmem:[%s2632_s29 + $0x78] sm:$0xff] %v1891_v17   ;;  %2003 = vst [vmem:[%s2632_s29 + $0xf8] sm:$0xff] %v1971_v52  }
 0x1c4   : > { %2295 = shalt.err (!%p2292_p3)
}
 0x1c5   : > { %s2296_s26 = scalar_lea.hbm %s2729_s7, 4096  ;;  %s2300_s20 = scalar_lea.hbm %s2783_s3, 16384 }
 0x1c6   : > { %p2297_p5 = scmp.ne.s32.totalorder %s2729_s7, %s2296_s26  ;;  %p2301_p6 = scmp.lt.s32.totalorder %s2729_s7, %s2783_s3 }
 0x1c7   : > { %p2302_p11 = scmp.lt.s32.totalorder %s2300_s20, %s2296_s26 }
 0x1c8   : > { %p2298_p7 = pnand %p2297_p5, %p2794_p4 }
 0x1c9   : > { %p2303_p10 = por %p2302_p11, %p2301_p6 }
 0x1ca   : > { %p2299_p9 = pneg %p2298_p7 }
 0x1cc   : > { %p2304_p1 = pnand %p2303_p10, %p2299_p9 }
 0x1ce   : > { %2307 = shalt.err (!%p2304_p1)
}
 0x1cf   : > { %s2376_s29 = smov 64   ;;  %s2377_s4 = smov 4  }
 0x1d0   : > { %2042 = dma.vmem_to_hbm [thread:$0]  (%p2794_p4), %s2731_s21, 4096, %s2729_s7, %s1453_s15, %s2376_s29, %s2376_s29, %s2377_s4  }
 0x1d1 PF: > { %p2059_p8 = scmp.ge.s32.totalorder %s2366_s17, 2  ;;  %s1482_s5 = sand.u32 1, %s2346_s12  }
 0x1d2   : > { %p2795_p12 = scmp.ne.s32.totalorder %s2788_s23, 0  ;;  %s1483_s6 = scalar_lea.sflag [#allocation4], %s1482_s5 }
 0x1d4   : > { %p2053_p13 = pnand %p2059_p8, %p2795_p12 }
 0x1d6   : > { %p2054_p0 = pneg %p2053_p13 }
 0x1d8   : > { %2341 = dma.done.wait (%p2054_p0), %s1483_s6, 4096  }
 0x1d9   : > { %2343 = vsyncadd (%p2054_p0), %s1483_s6, 4294963200  ;;  %s20_s17 = sadd.s32 1, %s2366_s17   ;;  %s2796_s12 = smov %s2350_s13 }
 0x1da   : > { %p17_p2 = scmp.ge.s32.totalorder %s20_s17, 6   ;;  %s2797_s13 = smov %s2354_s14 }
 0x1db   : > { %s2798_s14 = smov %s2493_s19  ;;  %s2799_s15 = smov %s2362_s16 }
 0x1dc   : > { %s2800_s16 = smov %s2802_s28  ;;  %19 = sbr.rel (!%p17_p2) target bundleno = 7 (0x7), region = 85 }
 0x1e1   :  { %1488 = vsyncpa [#allocation3], 1 }
 0x1e2   :  { %1490 = vsyncpa [#allocation3 + $0x1], 1 }
 0x1e3   :  { %1491 = vsyncpa [#allocation6], 1 }
 0x1e4   :  { %1492 = vsyncpa [#allocation4], 1 }
 0x1e5   :  { %1494 = vsyncpa [#allocation4 + $0x1], 1 }

</bundles_post_ra>
